<compile_context>
chip_gen: v7x
topology: tpu7x:2x2x1
jax: 0.10.0
libtpu: 0.0.40
codegen_flags: <defaults>
</compile_context>

<pallas_src>
import functools

import jax
import jax.numpy as jnp
from jax.experimental import pallas as pl
from jax.experimental.pallas import tpu as pltpu

MAX_NORM = 1.0   # nn.Embedding(..., max_norm=1, norm_type=2)
EPS = 1e-7       # PyTorch renorm epsilon


def _round_up(x, m):
    return (x + m - 1) // m * m


def transd_kernel(heads_ref, rels_ref, tails_ref,       # scalar prefetch (SMEM)
                  ent_all_hbm, rel_all_hbm,             # HBM tables (pl.ANY)
                  o_ref,                                # (tb, 1) VMEM output tile
                  lhs_buf, rhs_buf, rel_buf, sem,       # scratch: VMEM rows + DMA sems
                  *, p, tb, d):
    """Computes TransD energies for one tile of tb triplets.

    Tables are stored as [embed | transfer] rows of width 2*d; lhs/rhs rows come
    from the entity table, rel rows from the relation table.
    """
    base = pl.program_id(0) * tb

    # ---- Fused gather: put all 3*tb row DMAs in flight, then wait. ----------
    @pl.loop(0, tb)
    def _issue(r):
        h = heads_ref[base + r]
        t = tails_ref[base + r]
        rl = rels_ref[base + r]
        pltpu.make_async_copy(ent_all_hbm.at[pl.ds(h, 1)],
                              lhs_buf.at[pl.ds(r, 1)], sem.at[0]).start()
        pltpu.make_async_copy(ent_all_hbm.at[pl.ds(t, 1)],
                              rhs_buf.at[pl.ds(r, 1)], sem.at[1]).start()
        pltpu.make_async_copy(rel_all_hbm.at[pl.ds(rl, 1)],
                              rel_buf.at[pl.ds(r, 1)], sem.at[2]).start()

    @pl.loop(0, tb)
    def _wait(r):
        # Wait descriptors only need the destination slice + semaphore; one wait
        # per issued row copy (works regardless of sem counting convention).
        pltpu.make_async_copy(ent_all_hbm.at[pl.ds(0, 1)],
                              lhs_buf.at[pl.ds(r, 1)], sem.at[0]).wait()
        pltpu.make_async_copy(ent_all_hbm.at[pl.ds(0, 1)],
                              rhs_buf.at[pl.ds(r, 1)], sem.at[1]).wait()
        pltpu.make_async_copy(rel_all_hbm.at[pl.ds(0, 1)],
                              rel_buf.at[pl.ds(r, 1)], sem.at[2]).wait()

    # ---- Compute (VPU/XLU only; no MXU work). -------------------------------
    lhs_all = lhs_buf[...]          # (tb, 2d)
    rhs_all = rhs_buf[...]
    rel_all = rel_buf[...]

    lhs_e, lhs_t = lhs_all[:, :d], lhs_all[:, d:]
    rhs_e, rhs_t = rhs_all[:, :d], rhs_all[:, d:]
    rel_e, rel_t = rel_all[:, :d], rel_all[:, d:]

    def renorm(x):
        # nn.Embedding(max_norm=1, norm_type=2): rows with ||x||_2 > 1 are
        # rescaled by max_norm / (norm + 1e-7) at lookup time.
        n = jnp.sqrt(jnp.sum(x * x, axis=-1, keepdims=True))
        return x * jnp.where(n > MAX_NORM, MAX_NORM / (n + EPS), 1.0)

    lhs_e = renorm(lhs_e)
    lhs_t = renorm(lhs_t)
    rhs_e = renorm(rhs_e)
    rhs_t = renorm(rhs_t)
    rel_e = renorm(rel_e)
    rel_t = renorm(rel_t)

    # TransD transfer: proj_e = e + sum(e * e_transfer, dim=1, keepdim) * rel_transfer
    lhs = lhs_e + jnp.sum(lhs_e * lhs_t, axis=-1, keepdims=True) * rel_t
    rhs = rhs_e + jnp.sum(rhs_e * rhs_t, axis=-1, keepdims=True) * rel_t

    diff = lhs + rel_e - rhs

    if p == 2:
        enrg = jnp.sqrt(jnp.sum(diff * diff, axis=-1, keepdims=True))
    elif p == 1:
        enrg = jnp.sum(jnp.abs(diff), axis=-1, keepdims=True)
    else:
        enrg = jnp.sum(jnp.abs(diff) ** p, axis=-1, keepdims=True) ** (1.0 / p)

    o_ref[...] = enrg.astype(o_ref.dtype)


def transd_forward(triplets, ent_embeds, rel_embeds, ent_transfer, rel_transfer,
                   *, p=2, max_tile=512):
    """TransD.forward(triplets) -> energies of shape (B,)."""
    B = triplets.shape[0]
    D = ent_embeds.shape[1]

    heads = triplets[:, 0].astype(jnp.int32)
    rels = triplets[:, 1].astype(jnp.int32)
    tails = triplets[:, 2].astype(jnp.int32)

    # [embed | transfer] concatenated tables -> one fat row per lookup.
    # (In a real model these would simply be *stored* this way; the concat here
    # is a one-time layout transform for the demo.)
    ent_all = jnp.concatenate([ent_embeds, ent_transfer], axis=1)    # (num_ent, 2D)
    rel_all = jnp.concatenate([rel_embeds, rel_transfer], axis=1)    # (num_rel, 2D)

    # Batch tile: multiple of 8 sublanes, capped so the 3 gather buffers
    # (tb x 2D f32 each) stay well under VMEM limits on every generation
    # (incl. v7x's 64 MiB) and so large batches give several grid steps.
    tb = max(8, min(max_tile, _round_up(B, 8)))
    Bp = _round_up(B, tb)                 # padded batch (cdiv-safe tiling)
    num_tiles = Bp // tb

    pad = Bp - B
    if pad:
        heads = jnp.pad(heads, (0, pad))  # pad with index 0 (valid row); outputs dropped
        rels = jnp.pad(rels, (0, pad))
        tails = jnp.pad(tails, (0, pad))

    kernel = functools.partial(transd_kernel, p=p, tb=tb, d=D)

    out = pl.pallas_call(
        kernel,
        out_shape=jax.ShapeDtypeStruct((Bp, 1), jnp.float32),
        grid_spec=pltpu.PrefetchScalarGridSpec(
            num_scalar_prefetch=3,                       # heads, rels, tails -> SMEM
            grid=(num_tiles,),
            in_specs=[
                pl.BlockSpec(memory_space=pl.ANY),       # ent_all stays in HBM
                pl.BlockSpec(memory_space=pl.ANY),       # rel_all stays in HBM
            ],
            out_specs=pl.BlockSpec((tb, 1), lambda i, h, r, t: (i, 0)),
            scratch_shapes=[
                pltpu.VMEM((tb, 2 * D), jnp.float32),    # lhs  [embed|transfer] rows
                pltpu.VMEM((tb, 2 * D), jnp.float32),    # rhs  [embed|transfer] rows
                pltpu.VMEM((tb, 2 * D), jnp.float32),    # rel  [embed|transfer] rows
                pltpu.SemaphoreType.DMA((3,)),
            ],
        ),
        compiler_params=pltpu.CompilerParams(
            dimension_semantics=("parallel",),           # megacore-shardable
            vmem_limit_bytes=32 * 1024 * 1024,           # explicit, safe on v5e/v6e/v7x
        ),
    )(heads, rels, tails, ent_all, rel_all)

    return out[:B, 0]


def _reference(triplets, ent_embeds, rel_embeds, ent_transfer, rel_transfer, p=2):
    """Pure-JAX reference mirroring the PyTorch forward."""
    def renorm(x):
        n = jnp.linalg.norm(x, axis=-1, keepdims=True)
        return x * jnp.where(n > MAX_NORM, MAX_NORM / (n + EPS), 1.0)

    lhs_e = renorm(jnp.take(ent_embeds, triplets[:, 0], axis=0))
    lhs_t = renorm(jnp.take(ent_transfer, triplets[:, 0], axis=0))
    rhs_e = renorm(jnp.take(ent_embeds, triplets[:, 2], axis=0))
    rhs_t = renorm(jnp.take(ent_transfer, triplets[:, 2], axis=0))
    rel_e = renorm(jnp.take(rel_embeds, triplets[:, 1], axis=0))
    rel_t = renorm(jnp.take(rel_transfer, triplets[:, 1], axis=0))

    lhs = lhs_e + jnp.sum(lhs_e * lhs_t, axis=-1, keepdims=True) * rel_t
    rhs = rhs_e + jnp.sum(rhs_e * rhs_t, axis=-1, keepdims=True) * rel_t
    diff = lhs + rel_e - rhs
    return jnp.sum(jnp.abs(diff) ** p, axis=-1) ** (1.0 / p)


if __name__ == "__main__":
    # Small, forward-consistent shapes.
    num_ent, num_rel, embed_dim, p = 64, 16, 32, 2

    key = jax.random.PRNGKey(0)
    k_ent, k_rel, k_et, k_rt, k_trip = jax.random.split(key, 5)

    r = 6.0 / jnp.sqrt(jnp.asarray(embed_dim, jnp.float32))
    # _ent_embeds / rel_embeds: uniform(-r, r) (as in TransD.__init__)
    ent_embeds = jax.random.uniform(k_ent, (num_ent, embed_dim),
                                    jnp.float32, minval=-r, maxval=r)
    rel_embeds = jax.random.uniform(k_rel, (num_rel, embed_dim),
                                    jnp.float32, minval=-r, maxval=r)
    # ent_transfer / rel_transfer: default nn.Embedding init ~ N(0, 1)
    ent_transfer = jax.random.normal(k_et, (num_ent, embed_dim), jnp.float32)
    rel_transfer = jax.random.normal(k_rt, (num_rel, embed_dim), jnp.float32)

    # Test a multiple-of-8 batch and a ragged batch (exercises tail padding).
    for batch in (8, 5):
        heads = jax.random.randint(jax.random.fold_in(k_trip, 3 * batch + 0),
                                   (batch, 1), 0, num_ent)
        rels = jax.random.randint(jax.random.fold_in(k_trip, 3 * batch + 1),
                                  (batch, 1), 0, num_rel)
        tails = jax.random.randint(jax.random.fold_in(k_trip, 3 * batch + 2),
                                   (batch, 1), 0, num_ent)
        triplets = jnp.concatenate([heads, rels, tails], axis=1).astype(jnp.int32)

        enrgs = transd_forward(triplets, ent_embeds, rel_embeds,
                               ent_transfer, rel_transfer, p=p)
        enrgs = jax.block_until_ready(enrgs)

        ref = _reference(triplets, ent_embeds, rel_embeds,
                         ent_transfer, rel_transfer, p=p)
        assert enrgs.shape == (batch,)
        assert jnp.allclose(enrgs, ref, atol=1e-5, rtol=1e-5), (batch, enrgs, ref)

    print("KERNEL_OK")
</pallas_src>

<mosaic_0001>
module attributes {stable_mosaic.version = 11 : i64} {
  func.func @transd_kernel(%arg0: i32, %arg1: memref<8xi32, #tpu.memory_space<smem>>, %arg2: memref<8xi32, #tpu.memory_space<smem>>, %arg3: memref<8xi32, #tpu.memory_space<smem>>, %arg4: memref<64x64xf32, #tpu.memory_space<any>>, %arg5: memref<16x64xf32, #tpu.memory_space<any>>, %arg6: memref<8x1xf32, #tpu.memory_space<vmem>>, %arg7: memref<8x64xf32, #tpu.memory_space<vmem>>, %arg8: memref<8x64xf32, #tpu.memory_space<vmem>>, %arg9: memref<8x64xf32, #tpu.memory_space<vmem>>, %arg10: memref<3x!tpu.dma_semaphore, #tpu.memory_space<semaphore_mem>>) attributes {dimension_semantics = [#tpu.dimension_semantics<parallel>], iteration_bounds = array<i64: 1>, scalar_prefetch = 3 : i64, scratch_operands = 4 : i64, tpu.core_type = #tpu.core_type<tc>, window_params = [{}, {}, {transform_indices = @transform_2, window_bounds = array<i64: 8, 1>}]} {
    %c8_i32 = arith.constant 8 : i32
    %0 = arith.muli %arg0, %c8_i32 : i32
    %c0_i32 = arith.constant 0 : i32
    %c8_i32_0 = arith.constant 8 : i32
    %1 = arith.addi %c0_i32, %c8_i32_0 : i32
    %c1_i32 = arith.constant 1 : i32
    scf.for %arg11 = %c0_i32 to %1 step %c1_i32  : i32 {
      %c1_i32_45 = arith.constant 1 : i32
      %115 = arith.muli %arg11, %c1_i32_45 : i32
      %c0_i32_46 = arith.constant 0 : i32
      %116 = arith.addi %c0_i32_46, %115 : i32
      %117 = arith.addi %0, %116 : i32
      %118 = arith.index_cast %117 : i32 to index
      %119 = memref.load %arg1[%118] : memref<8xi32, #tpu.memory_space<smem>>
      %120 = arith.addi %0, %116 : i32
      %121 = arith.index_cast %120 : i32 to index
      %122 = memref.load %arg3[%121] : memref<8xi32, #tpu.memory_space<smem>>
      %123 = arith.addi %0, %116 : i32
      %124 = arith.index_cast %123 : i32 to index
      %125 = memref.load %arg2[%124] : memref<8xi32, #tpu.memory_space<smem>>
      %c0_i32_47 = arith.constant 0 : i32
      %c0_i32_48 = arith.constant 0 : i32
      %126 = tpu.memref_slice %arg4[%119, %c0_i32_48] : memref<64x64xf32, #tpu.memory_space<any>> -> memref<1x64xf32, #tpu.memory_space<any>>
      %c0_i32_49 = arith.constant 0 : i32
      %127 = tpu.memref_slice %arg7[%116, %c0_i32_49] : memref<8x64xf32, #tpu.memory_space<vmem>> -> memref<1x64xf32, #tpu.memory_space<vmem>>
      %128 = tpu.memref_slice %arg10[%c0_i32_47] : memref<3x!tpu.dma_semaphore, #tpu.memory_space<semaphore_mem>> -> memref<1x!tpu.dma_semaphore, #tpu.memory_space<semaphore_mem>>
      %129 = tpu.memref_squeeze %128 : memref<1x!tpu.dma_semaphore, #tpu.memory_space<semaphore_mem>> -> memref<!tpu.dma_semaphore, #tpu.memory_space<semaphore_mem>>
      tpu.enqueue_dma source(%126 : memref<1x64xf32, #tpu.memory_space<any>>) target(%127 : memref<1x64xf32, #tpu.memory_space<vmem>>) target_semaphore(%129 : memref<!tpu.dma_semaphore, #tpu.memory_space<semaphore_mem>>)
      %c1_i32_50 = arith.constant 1 : i32
      %c0_i32_51 = arith.constant 0 : i32
      %130 = tpu.memref_slice %arg4[%122, %c0_i32_51] : memref<64x64xf32, #tpu.memory_space<any>> -> memref<1x64xf32, #tpu.memory_space<any>>
      %c0_i32_52 = arith.constant 0 : i32
      %131 = tpu.memref_slice %arg8[%116, %c0_i32_52] : memref<8x64xf32, #tpu.memory_space<vmem>> -> memref<1x64xf32, #tpu.memory_space<vmem>>
      %132 = tpu.memref_slice %arg10[%c1_i32_50] : memref<3x!tpu.dma_semaphore, #tpu.memory_space<semaphore_mem>> -> memref<1x!tpu.dma_semaphore, #tpu.memory_space<semaphore_mem>>
      %133 = tpu.memref_squeeze %132 : memref<1x!tpu.dma_semaphore, #tpu.memory_space<semaphore_mem>> -> memref<!tpu.dma_semaphore, #tpu.memory_space<semaphore_mem>>
      tpu.enqueue_dma source(%130 : memref<1x64xf32, #tpu.memory_space<any>>) target(%131 : memref<1x64xf32, #tpu.memory_space<vmem>>) target_semaphore(%133 : memref<!tpu.dma_semaphore, #tpu.memory_space<semaphore_mem>>)
      %c2_i32 = arith.constant 2 : i32
      %c0_i32_53 = arith.constant 0 : i32
      %134 = tpu.memref_slice %arg5[%125, %c0_i32_53] : memref<16x64xf32, #tpu.memory_space<any>> -> memref<1x64xf32, #tpu.memory_space<any>>
      %c0_i32_54 = arith.constant 0 : i32
      %135 = tpu.memref_slice %arg9[%116, %c0_i32_54] : memref<8x64xf32, #tpu.memory_space<vmem>> -> memref<1x64xf32, #tpu.memory_space<vmem>>
      %136 = tpu.memref_slice %arg10[%c2_i32] : memref<3x!tpu.dma_semaphore, #tpu.memory_space<semaphore_mem>> -> memref<1x!tpu.dma_semaphore, #tpu.memory_space<semaphore_mem>>
      %137 = tpu.memref_squeeze %136 : memref<1x!tpu.dma_semaphore, #tpu.memory_space<semaphore_mem>> -> memref<!tpu.dma_semaphore, #tpu.memory_space<semaphore_mem>>
      tpu.enqueue_dma source(%134 : memref<1x64xf32, #tpu.memory_space<any>>) target(%135 : memref<1x64xf32, #tpu.memory_space<vmem>>) target_semaphore(%137 : memref<!tpu.dma_semaphore, #tpu.memory_space<semaphore_mem>>)
    }
    %c8_i32_1 = arith.constant 8 : i32
    %c0_i32_2 = arith.constant 0 : i32
    %c8_i32_3 = arith.constant 8 : i32
    %2 = arith.addi %c0_i32_2, %c8_i32_3 : i32
    %c1_i32_4 = arith.constant 1 : i32
    scf.for %arg11 = %c0_i32_2 to %2 step %c1_i32_4  : i32 {
      %c1_i32_45 = arith.constant 1 : i32
      %115 = arith.muli %arg11, %c1_i32_45 : i32
      %c0_i32_46 = arith.constant 0 : i32
      %116 = arith.addi %c0_i32_46, %115 : i32
      %c0_i32_47 = arith.constant 0 : i32
      %c0_i32_48 = arith.constant 0 : i32
      %c0_i32_49 = arith.constant 0 : i32
      %117 = tpu.memref_slice %arg4[%c0_i32_48, %c0_i32_49] : memref<64x64xf32, #tpu.memory_space<any>> -> memref<1x64xf32, #tpu.memory_space<any>>
      %c0_i32_50 = arith.constant 0 : i32
      %118 = tpu.memref_slice %arg7[%116, %c0_i32_50] : memref<8x64xf32, #tpu.memory_space<vmem>> -> memref<1x64xf32, #tpu.memory_space<vmem>>
      %119 = tpu.memref_slice %arg10[%c0_i32_47] : memref<3x!tpu.dma_semaphore, #tpu.memory_space<semaphore_mem>> -> memref<1x!tpu.dma_semaphore, #tpu.memory_space<semaphore_mem>>
      %120 = tpu.memref_squeeze %119 : memref<1x!tpu.dma_semaphore, #tpu.memory_space<semaphore_mem>> -> memref<!tpu.dma_semaphore, #tpu.memory_space<semaphore_mem>>
      tpu.wait_dma2 semaphore(%120 : memref<!tpu.dma_semaphore, #tpu.memory_space<semaphore_mem>>) src(%117 : memref<1x64xf32, #tpu.memory_space<any>>) dst(%118 : memref<1x64xf32, #tpu.memory_space<vmem>>)
      %c1_i32_51 = arith.constant 1 : i32
      %c0_i32_52 = arith.constant 0 : i32
      %c0_i32_53 = arith.constant 0 : i32
      %121 = tpu.memref_slice %arg4[%c0_i32_52, %c0_i32_53] : memref<64x64xf32, #tpu.memory_space<any>> -> memref<1x64xf32, #tpu.memory_space<any>>
      %c0_i32_54 = arith.constant 0 : i32
      %122 = tpu.memref_slice %arg8[%116, %c0_i32_54] : memref<8x64xf32, #tpu.memory_space<vmem>> -> memref<1x64xf32, #tpu.memory_space<vmem>>
      %123 = tpu.memref_slice %arg10[%c1_i32_51] : memref<3x!tpu.dma_semaphore, #tpu.memory_space<semaphore_mem>> -> memref<1x!tpu.dma_semaphore, #tpu.memory_space<semaphore_mem>>
      %124 = tpu.memref_squeeze %123 : memref<1x!tpu.dma_semaphore, #tpu.memory_space<semaphore_mem>> -> memref<!tpu.dma_semaphore, #tpu.memory_space<semaphore_mem>>
      tpu.wait_dma2 semaphore(%124 : memref<!tpu.dma_semaphore, #tpu.memory_space<semaphore_mem>>) src(%121 : memref<1x64xf32, #tpu.memory_space<any>>) dst(%122 : memref<1x64xf32, #tpu.memory_space<vmem>>)
      %c2_i32 = arith.constant 2 : i32
      %c0_i32_55 = arith.constant 0 : i32
      %c0_i32_56 = arith.constant 0 : i32
      %125 = tpu.memref_slice %arg5[%c0_i32_55, %c0_i32_56] : memref<16x64xf32, #tpu.memory_space<any>> -> memref<1x64xf32, #tpu.memory_space<any>>
      %c0_i32_57 = arith.constant 0 : i32
      %126 = tpu.memref_slice %arg9[%116, %c0_i32_57] : memref<8x64xf32, #tpu.memory_space<vmem>> -> memref<1x64xf32, #tpu.memory_space<vmem>>
      %127 = tpu.memref_slice %arg10[%c2_i32] : memref<3x!tpu.dma_semaphore, #tpu.memory_space<semaphore_mem>> -> memref<1x!tpu.dma_semaphore, #tpu.memory_space<semaphore_mem>>
      %128 = tpu.memref_squeeze %127 : memref<1x!tpu.dma_semaphore, #tpu.memory_space<semaphore_mem>> -> memref<!tpu.dma_semaphore, #tpu.memory_space<semaphore_mem>>
      tpu.wait_dma2 semaphore(%128 : memref<!tpu.dma_semaphore, #tpu.memory_space<semaphore_mem>>) src(%125 : memref<1x64xf32, #tpu.memory_space<any>>) dst(%126 : memref<1x64xf32, #tpu.memory_space<vmem>>)
    }
    %c8_i32_5 = arith.constant 8 : i32
    %c0 = arith.constant 0 : index
    %c0_6 = arith.constant 0 : index
    %3 = vector.load %arg7[%c0, %c0_6] : memref<8x64xf32, #tpu.memory_space<vmem>>, vector<8x64xf32>
    %c0_7 = arith.constant 0 : index
    %c0_8 = arith.constant 0 : index
    %4 = vector.load %arg8[%c0_7, %c0_8] : memref<8x64xf32, #tpu.memory_space<vmem>>, vector<8x64xf32>
    %c0_9 = arith.constant 0 : index
    %c0_10 = arith.constant 0 : index
    %5 = vector.load %arg9[%c0_9, %c0_10] : memref<8x64xf32, #tpu.memory_space<vmem>>, vector<8x64xf32>
    %6 = vector.extract_strided_slice %3 {offsets = [0, 0], sizes = [8, 32], strides = [1, 1]} : vector<8x64xf32> to vector<8x32xf32>
    %7 = vector.extract_strided_slice %3 {offsets = [0, 32], sizes = [8, 32], strides = [1, 1]} : vector<8x64xf32> to vector<8x32xf32>
    %8 = vector.extract_strided_slice %4 {offsets = [0, 0], sizes = [8, 32], strides = [1, 1]} : vector<8x64xf32> to vector<8x32xf32>
    %9 = vector.extract_strided_slice %4 {offsets = [0, 32], sizes = [8, 32], strides = [1, 1]} : vector<8x64xf32> to vector<8x32xf32>
    %10 = vector.extract_strided_slice %5 {offsets = [0, 0], sizes = [8, 32], strides = [1, 1]} : vector<8x64xf32> to vector<8x32xf32>
    %11 = vector.extract_strided_slice %5 {offsets = [0, 32], sizes = [8, 32], strides = [1, 1]} : vector<8x64xf32> to vector<8x32xf32>
    %12 = arith.mulf %6, %6 : vector<8x32xf32>
    %cst = arith.constant dense<0.000000e+00> : vector<8xf32>
    %13 = vector.multi_reduction <add>, %12, %cst [1] : vector<8x32xf32> to vector<8xf32>
    %14 = vector.shape_cast %13 : vector<8xf32> to vector<8x1xf32>
    %15 = math.sqrt %14 : vector<8x1xf32>
    %cst_11 = arith.constant 1.000000e+00 : f32
    %16 = vector.broadcast %cst_11 : f32 to vector<8x1xf32>
    %17 = arith.cmpf ogt, %15, %16 : vector<8x1xf32>
    %cst_12 = arith.constant 1.000000e-07 : f32
    %18 = vector.broadcast %cst_12 : f32 to vector<8x1xf32>
    %19 = arith.addf %15, %18 : vector<8x1xf32>
    %cst_13 = arith.constant 1.000000e+00 : f32
    %20 = vector.broadcast %cst_13 : f32 to vector<8x1xf32>
    %21 = arith.divf %20, %19 : vector<8x1xf32>
    %cst_14 = arith.constant 1.000000e+00 : f32
    %22 = vector.broadcast %cst_14 : f32 to vector<8x1xf32>
    %23 = arith.select %17, %21, %22 : vector<8x1xi1>, vector<8x1xf32>
    %24 = vector.broadcast %23 : vector<8x1xf32> to vector<8x32xf32>
    %25 = arith.mulf %6, %24 : vector<8x32xf32>
    %26 = arith.mulf %7, %7 : vector<8x32xf32>
    %cst_15 = arith.constant dense<0.000000e+00> : vector<8xf32>
    %27 = vector.multi_reduction <add>, %26, %cst_15 [1] : vector<8x32xf32> to vector<8xf32>
    %28 = vector.shape_cast %27 : vector<8xf32> to vector<8x1xf32>
    %29 = math.sqrt %28 : vector<8x1xf32>
    %cst_16 = arith.constant 1.000000e+00 : f32
    %30 = vector.broadcast %cst_16 : f32 to vector<8x1xf32>
    %31 = arith.cmpf ogt, %29, %30 : vector<8x1xf32>
    %cst_17 = arith.constant 1.000000e-07 : f32
    %32 = vector.broadcast %cst_17 : f32 to vector<8x1xf32>
    %33 = arith.addf %29, %32 : vector<8x1xf32>
    %cst_18 = arith.constant 1.000000e+00 : f32
    %34 = vector.broadcast %cst_18 : f32 to vector<8x1xf32>
    %35 = arith.divf %34, %33 : vector<8x1xf32>
    %cst_19 = arith.constant 1.000000e+00 : f32
    %36 = vector.broadcast %cst_19 : f32 to vector<8x1xf32>
    %37 = arith.select %31, %35, %36 : vector<8x1xi1>, vector<8x1xf32>
    %38 = vector.broadcast %37 : vector<8x1xf32> to vector<8x32xf32>
    %39 = arith.mulf %7, %38 : vector<8x32xf32>
    %40 = arith.mulf %8, %8 : vector<8x32xf32>
    %cst_20 = arith.constant dense<0.000000e+00> : vector<8xf32>
    %41 = vector.multi_reduction <add>, %40, %cst_20 [1] : vector<8x32xf32> to vector<8xf32>
    %42 = vector.shape_cast %41 : vector<8xf32> to vector<8x1xf32>
    %43 = math.sqrt %42 : vector<8x1xf32>
    %cst_21 = arith.constant 1.000000e+00 : f32
    %44 = vector.broadcast %cst_21 : f32 to vector<8x1xf32>
    %45 = arith.cmpf ogt, %43, %44 : vector<8x1xf32>
    %cst_22 = arith.constant 1.000000e-07 : f32
    %46 = vector.broadcast %cst_22 : f32 to vector<8x1xf32>
    %47 = arith.addf %43, %46 : vector<8x1xf32>
    %cst_23 = arith.constant 1.000000e+00 : f32
    %48 = vector.broadcast %cst_23 : f32 to vector<8x1xf32>
    %49 = arith.divf %48, %47 : vector<8x1xf32>
    %cst_24 = arith.constant 1.000000e+00 : f32
    %50 = vector.broadcast %cst_24 : f32 to vector<8x1xf32>
    %51 = arith.select %45, %49, %50 : vector<8x1xi1>, vector<8x1xf32>
    %52 = vector.broadcast %51 : vector<8x1xf32> to vector<8x32xf32>
    %53 = arith.mulf %8, %52 : vector<8x32xf32>
    %54 = arith.mulf %9, %9 : vector<8x32xf32>
    %cst_25 = arith.constant dense<0.000000e+00> : vector<8xf32>
    %55 = vector.multi_reduction <add>, %54, %cst_25 [1] : vector<8x32xf32> to vector<8xf32>
    %56 = vector.shape_cast %55 : vector<8xf32> to vector<8x1xf32>
    %57 = math.sqrt %56 : vector<8x1xf32>
    %cst_26 = arith.constant 1.000000e+00 : f32
    %58 = vector.broadcast %cst_26 : f32 to vector<8x1xf32>
    %59 = arith.cmpf ogt, %57, %58 : vector<8x1xf32>
    %cst_27 = arith.constant 1.000000e-07 : f32
    %60 = vector.broadcast %cst_27 : f32 to vector<8x1xf32>
    %61 = arith.addf %57, %60 : vector<8x1xf32>
    %cst_28 = arith.constant 1.000000e+00 : f32
    %62 = vector.broadcast %cst_28 : f32 to vector<8x1xf32>
    %63 = arith.divf %62, %61 : vector<8x1xf32>
    %cst_29 = arith.constant 1.000000e+00 : f32
    %64 = vector.broadcast %cst_29 : f32 to vector<8x1xf32>
    %65 = arith.select %59, %63, %64 : vector<8x1xi1>, vector<8x1xf32>
    %66 = vector.broadcast %65 : vector<8x1xf32> to vector<8x32xf32>
    %67 = arith.mulf %9, %66 : vector<8x32xf32>
    %68 = arith.mulf %10, %10 : vector<8x32xf32>
    %cst_30 = arith.constant dense<0.000000e+00> : vector<8xf32>
    %69 = vector.multi_reduction <add>, %68, %cst_30 [1] : vector<8x32xf32> to vector<8xf32>
    %70 = vector.shape_cast %69 : vector<8xf32> to vector<8x1xf32>
    %71 = math.sqrt %70 : vector<8x1xf32>
    %cst_31 = arith.constant 1.000000e+00 : f32
    %72 = vector.broadcast %cst_31 : f32 to vector<8x1xf32>
    %73 = arith.cmpf ogt, %71, %72 : vector<8x1xf32>
    %cst_32 = arith.constant 1.000000e-07 : f32
    %74 = vector.broadcast %cst_32 : f32 to vector<8x1xf32>
    %75 = arith.addf %71, %74 : vector<8x1xf32>
    %cst_33 = arith.constant 1.000000e+00 : f32
    %76 = vector.broadcast %cst_33 : f32 to vector<8x1xf32>
    %77 = arith.divf %76, %75 : vector<8x1xf32>
    %cst_34 = arith.constant 1.000000e+00 : f32
    %78 = vector.broadcast %cst_34 : f32 to vector<8x1xf32>
    %79 = arith.select %73, %77, %78 : vector<8x1xi1>, vector<8x1xf32>
    %80 = vector.broadcast %79 : vector<8x1xf32> to vector<8x32xf32>
    %81 = arith.mulf %10, %80 : vector<8x32xf32>
    %82 = arith.mulf %11, %11 : vector<8x32xf32>
    %cst_35 = arith.constant dense<0.000000e+00> : vector<8xf32>
    %83 = vector.multi_reduction <add>, %82, %cst_35 [1] : vector<8x32xf32> to vector<8xf32>
    %84 = vector.shape_cast %83 : vector<8xf32> to vector<8x1xf32>
    %85 = math.sqrt %84 : vector<8x1xf32>
    %cst_36 = arith.constant 1.000000e+00 : f32
    %86 = vector.broadcast %cst_36 : f32 to vector<8x1xf32>
    %87 = arith.cmpf ogt, %85, %86 : vector<8x1xf32>
    %cst_37 = arith.constant 1.000000e-07 : f32
    %88 = vector.broadcast %cst_37 : f32 to vector<8x1xf32>
    %89 = arith.addf %85, %88 : vector<8x1xf32>
    %cst_38 = arith.constant 1.000000e+00 : f32
    %90 = vector.broadcast %cst_38 : f32 to vector<8x1xf32>
    %91 = arith.divf %90, %89 : vector<8x1xf32>
    %cst_39 = arith.constant 1.000000e+00 : f32
    %92 = vector.broadcast %cst_39 : f32 to vector<8x1xf32>
    %93 = arith.select %87, %91, %92 : vector<8x1xi1>, vector<8x1xf32>
    %94 = vector.broadcast %93 : vector<8x1xf32> to vector<8x32xf32>
    %95 = arith.mulf %11, %94 : vector<8x32xf32>
    %96 = arith.mulf %25, %39 : vector<8x32xf32>
    %cst_40 = arith.constant dense<0.000000e+00> : vector<8xf32>
    %97 = vector.multi_reduction <add>, %96, %cst_40 [1] : vector<8x32xf32> to vector<8xf32>
    %98 = vector.shape_cast %97 : vector<8xf32> to vector<8x1xf32>
    %99 = vector.broadcast %98 : vector<8x1xf32> to vector<8x32xf32>
    %100 = arith.mulf %99, %95 : vector<8x32xf32>
    %101 = arith.addf %25, %100 : vector<8x32xf32>
    %102 = arith.mulf %53, %67 : vector<8x32xf32>
    %cst_41 = arith.constant dense<0.000000e+00> : vector<8xf32>
    %103 = vector.multi_reduction <add>, %102, %cst_41 [1] : vector<8x32xf32> to vector<8xf32>
    %104 = vector.shape_cast %103 : vector<8xf32> to vector<8x1xf32>
    %105 = vector.broadcast %104 : vector<8x1xf32> to vector<8x32xf32>
    %106 = arith.mulf %105, %95 : vector<8x32xf32>
    %107 = arith.addf %53, %106 : vector<8x32xf32>
    %108 = arith.addf %101, %81 : vector<8x32xf32>
    %109 = arith.subf %108, %107 : vector<8x32xf32>
    %110 = arith.mulf %109, %109 : vector<8x32xf32>
    %cst_42 = arith.constant dense<0.000000e+00> : vector<8xf32>
    %111 = vector.multi_reduction <add>, %110, %cst_42 [1] : vector<8x32xf32> to vector<8xf32>
    %112 = vector.shape_cast %111 : vector<8xf32> to vector<8x1xf32>
    %113 = math.sqrt %112 : vector<8x1xf32>
    %c0_43 = arith.constant 0 : index
    %c0_44 = arith.constant 0 : index
    %114 = vector.load %arg6[%c0_43, %c0_44] : memref<8x1xf32, #tpu.memory_space<vmem>>, vector<8x1xf32>
    tpu.vector_store %arg6[%c0_43, %c0_44], %113 {strides = array<i32>} : memref<8x1xf32, #tpu.memory_space<vmem>>, vector<8x1xf32>,
    return
  }
  func.func @transform_2(%arg0: i32, %arg1: memref<8xi32, #tpu.memory_space<smem>>, %arg2: memref<8xi32, #tpu.memory_space<smem>>, %arg3: memref<8xi32, #tpu.memory_space<smem>>) -> (i32, i32) {
    %c0_i32 = arith.constant 0 : i32
    %c0_i32_0 = arith.constant 0 : i32
    return %arg0, %c0_i32 : i32, i32
  }
}

</mosaic_0001>

<bundles_post_ra>
// kernel: tpu_custom_call.1
= control target key start
LH: loop header
LB: loop body
LE: loop exit
PB: predicated region body
PF: predicated region fallthrough
CT: control target
= control target key end

     0   :  { %s633_s0 = inlined_call_operand.hbm [shape: s32[8], index: 0, kind: input, shape index: {}]   ;;  %s634_s3 = inlined_call_operand.hbm [shape: f32[64,64], index: 3, kind: input, shape index: {}]   ;;  %s635_s4 = inlined_call_operand.hbm [shape: f32[16,64], index: 4, kind: input, shape index: {}]   ;;  %s636_s5 = inlined_call_operand.vmem [shape: f32[8,1], index: 5, kind: output, shape index: {}]   ;;  %s637_s1 = inlined_call_operand.vmem [shape: s32[8], index: 1, kind: input, shape index: {}]   ;;  %s638_s2 = inlined_call_operand.vmem [shape: s32[8], index: 2, kind: input, shape index: {}]  }
   0x1   :  { %s345_s20 = scalar_lea.hbm %s633_s0, 16 }
   0x2   :  { %p346_p0 = scmp.ne.s32.totalorder %s633_s0, %s345_s20  ;;  %p349_p1 = scmp.lt.u32.totalorder %s345_s20, %s633_s0 }
   0x4   :  { %p351_p2 = pnand %p349_p1, %p346_p0 }
   0x6   :  { %354 = shalt.err (!%p351_p2)  }
   0x7   :  { %s475_s25 = smov [#allocation7]   ;;  %s12_s30 = sshll.u32 %s637_s1, 4  ;;  %s13_s30 = int_to_ptr.vmem [resolvable:$true] %s12_s30 }
   0x8   :  { %11 = dma.hbm_to_smem %s633_s0, 16, %s475_s25, [#allocation6] }
   0x9   :  { %s16_s8 = sshll.u32 %s638_s2, 4  ;;  %s355_s9 = scalar_lea.vmem %s13_s30, 16  ;;  %s17_s8 = int_to_ptr.vmem [resolvable:$true] %s16_s8 }
   0xa   :  { %p356_p3 = scmp.ne.s32.totalorder %s13_s30, %s355_s9  ;;  %p360_p4 = scmp.lt.s32.totalorder %s13_s30, %s13_s30 }
   0xb   :  { %p361_p5 = scmp.lt.s32.totalorder %s355_s9, %s355_s9 }
   0xd   :  { %p362_p6 = por %p361_p5, %p360_p4 }
   0xf   :  { %p363_p7 = pnand %p362_p6, %p356_p3 }
  0x11   :  { %366 = shalt.err (!%p363_p7)  }
  0x12   :  { %s476_s10 = smov [#allocation8]   ;;  %s367_s0 = scalar_lea.vmem %s17_s8, 16 }
  0x13   :  { %15 = dma.vmem_to_smem %s13_s30, 16, %s476_s10, [#allocation6] }
  0x14   :  { %p368_p8 = scmp.ne.s32.totalorder %s17_s8, %s367_s0  ;;  %p372_p9 = scmp.lt.s32.totalorder %s17_s8, %s17_s8 }
  0x15   :  { %p373_p10 = scmp.lt.s32.totalorder %s367_s0, %s367_s0 }
  0x17   :  { %p374_p11 = por %p373_p10, %p372_p9 }
  0x19   :  { %p375_p12 = pnand %p374_p11, %p368_p8 }
  0x1b   :  { %378 = shalt.err (!%p375_p12)  }
  0x1c   :  { %s477_s1 = smov [#allocation9]  }
  0x1d   :  { %19 = dma.vmem_to_smem %s17_s8, 16, %s477_s1, [#allocation6] }
  0x1e   :  { %459 = dma.done.wait [#allocation6], 48 }
  0x1f   :  { %460 = vsyncadd [#allocation6], 4294967248 }
  0x20   :  { %21 = sfence }
  0x21   :  { %s530_s2 = smov 0  }
  0x22 LB: > { %s30_s11 = sld [smem:[#allocation7 + %s469_s2]]  ;;  %s35_s12 = scalar_lea.vmem [#allocation2], %s469_s2  ;;  %s469_s2 = sphi %s530_s2, %s28_s2  }
  0x23   : > { %s43_s13 = sshll.u32 %s35_s12, 4  ;;  %s538_s14 = sld [smem:[#allocation9 + %s469_s2]]  ;;  %s544_s13 = int_to_ptr.vmem [resolvable:$true] %s43_s13 }
  0x24   : > { %s49_s15 = scalar_lea.vmem [#allocation3], %s469_s2  ;;  %s542_s17 = sld [smem:[#allocation8 + %s469_s2]] }
  0x25   : > { %s58_s16 = sshll.u32 %s49_s15, 4  ;;  %s64_s18 = scalar_lea.vmem [#allocation4], %s469_s2  ;;  %s546_s16 = int_to_ptr.vmem [resolvable:$true] %s58_s16 }
  0x26   : > { %s73_s19 = sshll.u32 %s64_s18, 4  ;;  %s381_s28 = scalar_lea.hbm %s634_s3, 1024  ;;  %s549_s19 = int_to_ptr.vmem [resolvable:$true] %s73_s19 }
  0x28   : > { %s293_s20 = sshll.u32 %s30_s11, 4 }
  0x29   : > { %s34_s23 = scalar_lea.hbm %s634_s3, %s293_s20  ;;  %s294_s24 = sshll.u32 %s538_s14, 4 }
  0x2a   : > { %s379_s25 = scalar_lea.hbm %s34_s23, 16  ;;  %p382_p0 = scmp.lt.u32.totalorder %s34_s23, %s634_s3 }
  0x2b   : > { %p380_p13 = scmp.ne.s32.totalorder %s34_s23, %s379_s25  ;;  %p383_p1 = scmp.lt.u32.totalorder %s381_s28, %s379_s25 }
  0x2c   : > { %p385_p3 = scmp.lt.u32.totalorder %s379_s25, %s34_s23 }
  0x2d   : > { %p384_p2 = por %p383_p1, %p382_p0 }
  0x2f   : > { %p386_p4 = por %p385_p3, %p384_p2 }
  0x31   : > { %p387_p5 = pnand %p386_p4, %p380_p13 }
  0x33   : > { %390 = shalt.err (!%p387_p5)  }
  0x34   : > { %s391_s6 = scalar_lea.vmem %s544_s13, 16  ;;  %s478_s7 = smov [#allocation2]  }
  0x35   : > { %p392_p6 = scmp.ne.s32.totalorder %s544_s13, %s391_s6  ;;  %s393_s8 = sshll.u32 %s478_s7, 4  ;;  %s394_s8 = int_to_ptr.vmem [resolvable:$false] %s393_s8 }
  0x36   : > { %s395_s9 = scalar_lea.vmem %s394_s8, 128  ;;  %p396_p7 = scmp.lt.s32.totalorder %s544_s13, %s394_s8 }
  0x37   : > { %p397_p8 = scmp.lt.s32.totalorder %s395_s9, %s391_s6 }
  0x39   : > { %p398_p9 = por %p397_p8, %p396_p7 }
  0x3b   : > { %p399_p10 = pnand %p398_p9, %p392_p6 }
  0x3d   : > { %402 = shalt.err (!%p399_p10)  }
  0x3e   : > { %46 = dma.hbm_to_vmem [thread:$0]  %s34_s23, 16, %s544_s13, [#allocation5] }
  0x3f   : > { %s48_s1 = scalar_lea.hbm %s634_s3, %s294_s24  ;;  %s295_s11 = sshll.u32 %s542_s17, 4 }
  0x40   : > { %s403_s12 = scalar_lea.hbm %s48_s1, 16  ;;  %p406_p12 = scmp.lt.u32.totalorder %s48_s1, %s634_s3 }
  0x41   : > { %p404_p11 = scmp.ne.s32.totalorder %s48_s1, %s403_s12  ;;  %p407_p13 = scmp.lt.u32.totalorder %s381_s28, %s403_s12 }
  0x42   : > { %p409_p1 = scmp.lt.u32.totalorder %s403_s12, %s48_s1 }
  0x43   : > { %p408_p0 = por %p407_p13, %p406_p12 }
  0x45   : > { %p410_p2 = por %p409_p1, %p408_p0 }
  0x47   : > { %p411_p3 = pnand %p410_p2, %p404_p11 }
  0x49   : > { %414 = shalt.err (!%p411_p3)  }
  0x4a   : > { %s415_s13 = scalar_lea.vmem %s546_s16, 16  ;;  %s479_s18 = smov [#allocation3]  }
  0x4b   : > { %p416_p4 = scmp.ne.s32.totalorder %s546_s16, %s415_s13  ;;  %s417_s20 = sshll.u32 %s479_s18, 4  ;;  %s418_s20 = int_to_ptr.vmem [resolvable:$false] %s417_s20 }
  0x4c   : > { %s419_s17 = scalar_lea.vmem %s418_s20, 128  ;;  %p420_p5 = scmp.lt.s32.totalorder %s546_s16, %s418_s20 }
  0x4d   : > { %p421_p6 = scmp.lt.s32.totalorder %s419_s17, %s415_s13 }
  0x4f   : > { %p422_p7 = por %p421_p6, %p420_p5 }
  0x51   : > { %p423_p8 = pnand %p422_p7, %p416_p4 }
  0x53   : > { %426 = shalt.err (!%p423_p8)  }
  0x54   : > { %61 = dma.hbm_to_vmem [thread:$0]  %s48_s1, 16, %s546_s16, [#allocation5 + $0x1] }
  0x55   : > { %s63_s23 = scalar_lea.hbm %s635_s4, %s295_s11  ;;  %s429_s27 = scalar_lea.hbm %s635_s4, 256 }
  0x56   : > { %s427_s24 = scalar_lea.hbm %s63_s23, 16  ;;  %p430_p10 = scmp.lt.u32.totalorder %s63_s23, %s635_s4 }
  0x57   : > { %p428_p9 = scmp.ne.s32.totalorder %s63_s23, %s427_s24  ;;  %p431_p11 = scmp.lt.u32.totalorder %s429_s27, %s427_s24 }
  0x58   : > { %p433_p13 = scmp.lt.u32.totalorder %s427_s24, %s63_s23 }
  0x59   : > { %p432_p12 = por %p431_p11, %p430_p10 }
  0x5b   : > { %p434_p0 = por %p433_p13, %p432_p12 }
  0x5d   : > { %p435_p1 = pnand %p434_p0, %p428_p9 }
  0x5f   : > { %438 = shalt.err (!%p435_p1)  }
  0x60   : > { %s439_s16 = scalar_lea.vmem %s549_s19, 16  ;;  %s480_s30 = smov [#allocation4]  }
  0x61   : > { %p440_p2 = scmp.ne.s32.totalorder %s549_s19, %s439_s16  ;;  %s441_s6 = sshll.u32 %s480_s30, 4  ;;  %s442_s6 = int_to_ptr.vmem [resolvable:$false] %s441_s6 }
  0x62   : > { %s443_s7 = scalar_lea.vmem %s442_s6, 128  ;;  %p444_p3 = scmp.lt.s32.totalorder %s549_s19, %s442_s6 }
  0x63   : > { %p445_p4 = scmp.lt.s32.totalorder %s443_s7, %s439_s16 }
  0x65   : > { %p446_p5 = por %p445_p4, %p444_p3 }
  0x67   : > { %p447_p6 = pnand %p446_p5, %p440_p2 }
  0x69   : > { %450 = shalt.err (!%p447_p6)  }
  0x6a   : > { %76 = dma.hbm_to_vmem [thread:$0]  %s63_s23, 16, %s549_s19, [#allocation5 + $0x2] }
  0x6b   : > { %s28_s2 = sadd.s32 1, %s469_s2  }
  0x6c   : > { %p25_p7 = scmp.ge.s32.totalorder %s28_s2, 8  }
  0x6d   :  { %s471_s8 = smov (%p25_p7), 0  }
  0x6e   :  { %27 = sbr.rel (!%p25_p7) target bundleno = 34 (0x22), region = 58 }
  0x75 LB: > { %461 = dma.done.wait [#allocation5], 16  ;;  %s473_s8 = sphi %s471_s8, %s82_s8  }
  0x76   : > { %462 = vsyncadd [#allocation5], 4294967280 }
  0x77   : > { %463 = dma.done.wait [#allocation5 + $0x1], 16 }
  0x78   : > { %464 = vsyncadd [#allocation5 + $0x1], 4294967280 }
  0x79   : > { %465 = dma.done.wait [#allocation5 + $0x2], 16 }
  0x7a   : > { %466 = vsyncadd [#allocation5 + $0x2], 4294967280  ;;  %s82_s8 = sadd.s32 1, %s473_s8  }
  0x7b   : > { %p79_p8 = scmp.ge.s32.totalorder %s82_s8, 8  }
  0x7c   :  { %v592_v0 = vld [vmem:[#allocation2] sm:$0xff] (%p79_p8)  ;;  %v594_v1 = vld [vmem:[#allocation3] sm:$0xff] (%p79_p8)  ;;  %s481_s3 = smov (%p79_p8), 96   ;;  %vm96_vm0 = vcmask (%p79_p8), 261120   ;;  %v606_v10 = vld [vmem:[#allocation4] sm:$0xff] (%p79_p8) }
  0x7d   :  { %81 = sbr.rel (!%p79_p8) target bundleno = 117 (0x75), region = 69  ;;  %v95_v2 = vmul.f32 (%p79_p8), %v592_v0, %v592_v0  ;;  %v133_v3 = vmul.f32 (%p79_p8), %v594_v1, %v594_v1  ;;  %v610_v11 = vmul.f32 (%p79_p8), %v606_v10, %v606_v10 }
  0x7f   :  { %114 = vrot.lane.b32.xlu0 (%p79_p8), %v95_v2, %s481_s3  ;;  %v97_v4 = vsel (%p79_p8), %vm96_vm0, %v95_v2, 0.0  ;;  %v134_v9 = vsel (%p79_p8), %vm96_vm0, %v133_v3, 0.0  ;;  %v171_v60 = vsel (%p79_p8), %vm96_vm0, %v610_v11, 0.0 }
  0x83   :  { %151 = vrot.lane.b32.xlu0 (%p79_p8), %v133_v3, %s481_s3 }
  0xa2   :  { %98 = vadd.xlane.f32.xlu0 %v97_v4 }
  0xf1   :  { %v115_v5 = vpop.permute.xlu0 %114 }
  0xf2   :  { %v117_v6 = vsel %vm96_vm0, %v115_v5, 0.0 }
  0xf3   :  { %118 = vadd.xlane.f32.xlu1 %v117_v6 }
  0xf5   :  { %v152_v7 = vpop.permute.xlu0 %151 }
  0xf6   :  { %v154_v8 = vsel %vm96_vm0, %v152_v7, 0.0 }
  0xf7   :  { %155 = vadd.xlane.f32.xlu1 %v154_v8 }
  0xfb   :  { %135 = vadd.xlane.f32.xlu1 %v134_v9 }
 0x10c   :  { %188 = vrot.lane.b32.xlu1 %v610_v11, %s481_s3 }
 0x12f   :  { %v99_v35 = vpop.xlane.xlu0 %98 }
 0x130   :  { %vm102_vm7 = vcmp.eq.f32.partialorder %v99_v35, inf  ;;  %v105_v39 = vand.u32 2147483648, %v99_v35  ;;  %vm104_vm8 = vcmp.eq.f32.partialorder %v99_v35, 0.0 }
 0x180   :  { %v119_v12 = vpop.xlane.xlu1 %118 }
 0x181   :  { %319 = vrsqrt.f32 %v119_v12  ;;  %vm122_vm1 = vcmp.eq.f32.partialorder %v119_v12, inf  ;;  %v125_v16 = vand.u32 2147483648, %v119_v12  ;;  %vm124_vm2 = vcmp.eq.f32.partialorder %v119_v12, 0.0 }
 0x184   :  { %v156_v13 = vpop.xlane.xlu1 %155 }
 0x185   :  { %321 = vrsqrt.f32 %v156_v13  ;;  %vm159_vm3 = vcmp.eq.f32.partialorder %v156_v13, inf  ;;  %v162_v22 = vand.u32 2147483648, %v156_v13  ;;  %vm161_vm4 = vcmp.eq.f32.partialorder %v156_v13, 0.0 }
 0x188   :  { %v136_v32 = vpop.xlane.xlu1 %135 }
 0x189   :  { %vm139_vm9 = vcmp.eq.f32.partialorder %v136_v32, inf  ;;  %v142_v43 = vand.u32 2147483648, %v136_v32  ;;  %vm141_vm10 = vcmp.eq.f32.partialorder %v136_v32, 0.0 }
 0x18b   :  { %v320_v14 = vpop.eup %319 }
 0x18c   :  { %v121_v15 = vmul.f32 %v320_v14, %v119_v12  ;;  %v189_v33 = vpop.permute.xlu1 %188 }
 0x18d   :  { %v191_v34 = vsel %vm96_vm0, %v189_v33, 0.0 }
 0x18e   :  { %v123_v17 = vsel %vm122_vm1, %v119_v12, %v121_v15 }
 0x18f   :  { %v322_v18 = vpop.eup %321  ;;  %v126_v19 = vsel %vm124_vm2, %v125_v16, %v123_v17 }
 0x190   :  { %v158_v20 = vmul.f32 %v322_v18, %v156_v13  ;;  %v128_v21 = vadd.f32 1e-07, %v126_v19  ;;  %vm127_vm5 = vcmp.gt.f32.partialorder %v126_v19, 1.0 }
 0x192   :  { %323 = vrcp.f32 %v128_v21  ;;  %v160_v23 = vsel %vm159_vm3, %v156_v13, %v158_v20 }
 0x193   :  { %v163_v24 = vsel %vm161_vm4, %v162_v22, %v160_v23  ;;  %vm248_vm4 = vcmask 7168  }
 0x194   :  { %v165_v25 = vadd.f32 1e-07, %v163_v24  ;;  %vm164_vm6 = vcmp.gt.f32.partialorder %v163_v24, 1.0 }
 0x196   :  { %325 = vrcp.f32 %v165_v25 }
 0x197   :  { %327 = vrsqrt.f32 %v99_v35 }
 0x198   :  { %329 = vrsqrt.f32 %v136_v32 }
 0x19c   :  { %v324_v26 = vpop.eup %323 }
 0x19d   :  { %v131_v27 = vsel %vm127_vm5, %v324_v26, 1.0 }
 0x19e   :  { %v132_v28 = vmul.f32 %v131_v27, %v592_v0 }
 0x1a0   :  { %v326_v29 = vpop.eup %325  ;;  %208 = vrot.lane.b32.xlu1 %v132_v28, %s481_s3 }
 0x1a1   :  { %v168_v30 = vsel %vm164_vm6, %v326_v29, 1.0  ;;  %v328_v36 = vpop.eup %327 }
 0x1a2   :  { %v169_v31 = vmul.f32 %v168_v30, %v594_v1  ;;  %v101_v37 = vmul.f32 %v328_v36, %v99_v35  ;;  %v330_v38 = vpop.eup %329 }
 0x1a3   :  { %v138_v40 = vmul.f32 %v330_v38, %v136_v32 }
 0x1a4   :  { %222 = vrot.lane.b32.xlu1 %v169_v31, %s481_s3  ;;  %v103_v41 = vsel %vm102_vm7, %v99_v35, %v101_v37 }
 0x1a5   :  { %v106_v42 = vsel %vm104_vm8, %v105_v39, %v103_v41  ;;  %v140_v44 = vsel %vm139_vm9, %v136_v32, %v138_v40 }
 0x1a6   :  { %v108_v45 = vadd.f32 1e-07, %v106_v42  ;;  %v143_v46 = vsel %vm141_vm10, %v142_v43, %v140_v44  ;;  %vm107_vm11 = vcmp.gt.f32.partialorder %v106_v42, 1.0 }
 0x1a7   :  { %v145_v47 = vadd.f32 1e-07, %v143_v46  ;;  %vm144_vm12 = vcmp.gt.f32.partialorder %v143_v46, 1.0 }
 0x1a8   :  { %331 = vrcp.f32 %v108_v45 }
 0x1a9   :  { %333 = vrcp.f32 %v145_v47 }
 0x1b2   :  { %v332_v48 = vpop.eup %331 }
 0x1b3   :  { %v111_v49 = vsel %vm107_vm11, %v332_v48, 1.0  ;;  %v334_v50 = vpop.eup %333 }
 0x1b4   :  { %v112_v51 = vmul.f32 %v111_v49, %v592_v0  ;;  %v148_v53 = vsel %vm144_vm12, %v334_v50, 1.0 }
 0x1b5   :  { %v149_v55 = vmul.f32 %v148_v53, %v594_v1 }
 0x1c8   :  { %192 = vadd.xlane.f32.xlu1 %v191_v34 }
 0x212   :  { %v209_v52 = vpop.permute.xlu1 %208 }
 0x213   :  { %v211_v54 = vmul.f32 %v209_v52, %v112_v51 }
 0x215   :  { %v212_v56 = vsel %vm96_vm0, %v211_v54, 0.0 }
 0x216   :  { %v223_v57 = vpop.permute.xlu1 %222  ;;  %213 = vadd.xlane.f32.xlu0 %v212_v56 }
 0x217   :  { %v225_v58 = vmul.f32 %v223_v57, %v149_v55 }
 0x219   :  { %v226_v59 = vsel %vm96_vm0, %v225_v58, 0.0 }
 0x21a   :  { %227 = vadd.xlane.f32.xlu0 %v226_v59 }
 0x21e   :  { %172 = vadd.xlane.f32.xlu0 %v171_v60 }
 0x255   :  { %v193_v61 = vpop.xlane.xlu1 %192 }
 0x256   :  { %335 = vrsqrt.f32 %v193_v61  ;;  %vm196_vm13 = vcmp.eq.f32.partialorder %v193_v61, inf  ;;  %v199_v0 = vand.u32 2147483648, %v193_v61  ;;  %vm198_vm14 = vcmp.eq.f32.partialorder %v193_v61, 0.0 }
 0x260   :  { %v336_v62 = vpop.eup %335 }
 0x261   :  { %v195_v63 = vmul.f32 %v336_v62, %v193_v61 }
 0x263   :  { %v197_v2 = vsel %vm196_vm13, %v193_v61, %v195_v63 }
 0x264   :  { %v200_v1 = vsel %vm198_vm14, %v199_v0, %v197_v2 }
 0x265   :  { %v202_v3 = vadd.f32 1e-07, %v200_v1  ;;  %vm201_vm15 = vcmp.gt.f32.partialorder %v200_v1, 1.0 }
 0x267   :  { %337 = vrcp.f32 %v202_v3 }
 0x271   :  { %v338_v4 = vpop.eup %337 }
 0x272   :  { %v205_v5 = vsel %vm201_vm15, %v338_v4, 1.0 }
 0x273   :  { %v206_v6 = vmul.f32 %v205_v5, %v606_v10 }
 0x2a3   :  { %v214_v7 = vpop.xlane.xlu0 %213 }
 0x2a4   :  { %v215_v8 = vmul.f32 %v214_v7, %v206_v6 }
 0x2a6   :  { %217 = vrot.lane.b32.xlu0 %v215_v8, %s481_s3 }
 0x2a7   :  { %v228_v9 = vpop.xlane.xlu0 %227 }
 0x2a8   :  { %v229_v11 = vmul.f32 %v228_v9, %v206_v6 }
 0x2aa   :  { %231 = vrot.lane.b32.xlu0 %v229_v11, %s481_s3 }
 0x2ab   :  { %v173_v12 = vpop.xlane.xlu0 %172 }
 0x2ac   :  { %339 = vrsqrt.f32 %v173_v12  ;;  %vm176_vm1 = vcmp.eq.f32.partialorder %v173_v12, inf  ;;  %v179_v15 = vand.u32 2147483648, %v173_v12  ;;  %vm178_vm2 = vcmp.eq.f32.partialorder %v173_v12, 0.0 }
 0x2b6   :  { %v340_v13 = vpop.eup %339 }
 0x2b7   :  { %v175_v14 = vmul.f32 %v340_v13, %v173_v12 }
 0x2b9   :  { %v177_v16 = vsel %vm176_vm1, %v173_v12, %v175_v14 }
 0x2ba   :  { %v180_v17 = vsel %vm178_vm2, %v179_v15, %v177_v16 }
 0x2bb   :  { %v182_v18 = vadd.f32 1e-07, %v180_v17  ;;  %vm181_vm3 = vcmp.gt.f32.partialorder %v180_v17, 1.0 }
 0x2bd   :  { %341 = vrcp.f32 %v182_v18 }
 0x2c7   :  { %v342_v19 = vpop.eup %341 }
 0x2c8   :  { %v185_v20 = vsel %vm181_vm3, %v342_v19, 1.0 }
 0x2c9   :  { %v186_v23 = vmul.f32 %v185_v20, %v606_v10 }
 0x318   :  { %v218_v21 = vpop.permute.xlu0 %217 }
 0x319   :  { %v220_v22 = vadd.f32 %v218_v21, %v112_v51 }
 0x31b   :  { %v235_v25 = vadd.f32 %v220_v22, %v186_v23 }
 0x31c   :  { %v232_v24 = vpop.permute.xlu0 %231 }
 0x31d   :  { %v234_v26 = vadd.f32 %v232_v24, %v149_v55 }
 0x31f   :  { %v236_v27 = vsub.f32 %v235_v25, %v234_v26 }
 0x321   :  { %v237_v28 = vmul.f32 %v236_v27, %v236_v27 }
 0x323   :  { %v238_v29 = vsel %vm96_vm0, %v237_v28, 0.0 }
 0x324   :  { %239 = vadd.xlane.f32.xlu1 %v238_v29 }
 0x3b1   :  { %v240_v30 = vpop.xlane.xlu1 %239 }
 0x3b2   :  { %343 = vrsqrt.f32 %v240_v30  ;;  %vm243_vm5 = vcmp.eq.f32.partialorder %v240_v30, inf  ;;  %v246_v33 = vand.u32 2147483648, %v240_v30  ;;  %vm245_vm6 = vcmp.eq.f32.partialorder %v240_v30, 0.0 }
 0x3bc   :  { %v344_v31 = vpop.eup %343 }
 0x3bd   :  { %v242_v32 = vmul.f32 %v344_v31, %v240_v30 }
 0x3bf   :  { %v244_v34 = vsel %vm243_vm5, %v240_v30, %v242_v32 }
 0x3c0   :  { %v247_v35 = vsel %vm245_vm6, %v246_v33, %v244_v34 }
 0x3c1   :  { %249 = vst.msk [vmem:[%s636_s5] sm:$0xff] %vm248_vm4, %v247_v35 }
 0x3c2   :  { %254 = vsyncmov [#allocation5] }
 0x3c5   :  { %s255_s19 = vpop.sfrf %254 }
 0x3c6   :  { %p296_p9 = scmp.ne.s32.totalorder %s255_s19, 0 }
 0x3c8   :  { %259 = shalt.err (%p296_p9)  }
 0x3c9   :  { %261 = vsyncmov [#allocation5 + $0x1] }
 0x3cc   :  { %s262_s9 = vpop.sfrf %261 }
 0x3cd   :  { %p297_p10 = scmp.ne.s32.totalorder %s262_s9, 0 }
 0x3cf   :  { %266 = shalt.err (%p297_p10)  }
 0x3d0   :  { %268 = vsyncmov [#allocation5 + $0x2] }
 0x3d3   :  { %s269_s10 = vpop.sfrf %268 }
 0x3d4   :  { %p298_p11 = scmp.ne.s32.totalorder %s269_s10, 0 }
 0x3d6   :  { %273 = shalt.err (%p298_p11)  }

</bundles_post_ra>
